<compile_context>
chip_gen: v7x
topology: tpu7x:2x2x1
jax: 0.10.0
libtpu: 0.0.40
codegen_flags: <defaults>
</compile_context>

<pallas_src>
import functools

import jax
import jax.numpy as jnp
from jax.experimental import pallas as pl
from jax.experimental.pallas import tpu as pltpu


def _pose_criterion_kernel(params_ref, pred_ref, targ_ref, out_ref, acc_ref,
                           *, n_true, t_len):
    # params_ref: SMEM (4,)  f32 -> [sax, saq, srx, srq]
    # pred_ref:   VMEM (T, 6, TN) block  (batch chunk on the lane axis)
    # targ_ref:   VMEM (T, 6, TN) block
    # out_ref:    SMEM (1,)  f32 -> scalar loss (written on the final grid step)
    # acc_ref:    SMEM (4,)  f32 scratch: running [sum|dt|, sum|dq|, sum|vdt|, sum|vdq|]
    i = pl.program_id(0)
    last = pl.num_programs(0) - 1

    # Factor the difference once (in f32). Both the absolute and the relative (VO)
    # terms derive from it:  (p[1:]-p[:-1]) - (t[1:]-t[:-1]) == d[1:] - d[:-1].
    d = pred_ref[...].astype(jnp.float32) - targ_ref[...].astype(jnp.float32)
    abs_d = jnp.abs(d)

    # translation = pose components 0:3, rotation = 3:6 (sublane axis, off the lanes).
    t_abs = jnp.sum(abs_d[:, :3, :])
    q_abs = jnp.sum(abs_d[:, 3:, :])

    if t_len > 1:
        # calc_vos_simple == first-order difference along T (leading axis, no
        # cross-lane data movement).
        vd = jnp.abs(d[1:, :, :] - d[:-1, :, :])
        t_vo = jnp.sum(vd[:, :3, :])
        q_vo = jnp.sum(vd[:, 3:, :])
    else:
        t_vo = jnp.float32(0.0)
        q_vo = jnp.float32(0.0)

    @pl.when(i == 0)
    def _init():
        acc_ref[0] = t_abs
        acc_ref[1] = q_abs
        acc_ref[2] = t_vo
        acc_ref[3] = q_vo

    @pl.when(i > 0)
    def _accum():
        acc_ref[0] += t_abs
        acc_ref[1] += q_abs
        acc_ref[2] += t_vo
        acc_ref[3] += q_vo

    @pl.when(i == last)
    def _finalize():
        sax = params_ref[0]
        saq = params_ref[1]
        srx = params_ref[2]
        srq = params_ref[3]
        inv_abs = jnp.float32(1.0 / (n_true * t_len * 3))
        loss = (jnp.exp(-sax) * acc_ref[0] * inv_abs + sax
                + jnp.exp(-saq) * acc_ref[1] * inv_abs + saq)
        if t_len > 1:
            inv_vo = jnp.float32(1.0 / (n_true * (t_len - 1) * 3))
            loss = (loss
                    + jnp.exp(-srx) * acc_ref[2] * inv_vo + srx
                    + jnp.exp(-srq) * acc_ref[3] * inv_vo + srq)
        out_ref[0] = loss


def _pick_tile_n(t_len, vmem_budget_bytes=8 * 1024 * 1024):
    """Lane-tile size: 4 live VMEM buffers (2 inputs x double buffering), f32,
    sublane dim 6 pads to 8. Conservative for v5e's 16 MiB default scoped VMEM
    and v7x's 64 MiB physical VMEM."""
    row_bytes = t_len * 8 * 4
    tn = vmem_budget_bytes // (4 * row_bytes)
    tn = (tn // 128) * 128
    return int(max(128, min(tn, 2048)))


def pose_criterion_rel(pred, targ, sax=0.0, saq=0.0, srx=0.0, srq=0.0,
                       *, tile_n=None):
    """Pallas wrapper. pred, targ: (N, T, 6). Returns scalar float32 loss."""
    N, T, D = pred.shape
    assert D == 6 and targ.shape == pred.shape
    params = jnp.array([sax, saq, srx, srq], dtype=jnp.float32)

    # Lane-dense layout: batch on the 128-lane axis, pose-dim (6) on sublanes.
    # (No dtype cast here: bf16 inputs stay bf16 until inside the kernel.)
    pred_t = jnp.transpose(pred, (1, 2, 0))   # (T, 6, N)
    targ_t = jnp.transpose(targ, (1, 2, 0))

    if tile_n is None:
        tile_n = _pick_tile_n(T)

    if N <= tile_n:
        tn = N            # single block == full array: no (8,128) constraint, no pad
        n_pad = N
    else:
        tn = tile_n       # multiple of 128
        n_pad = ((N + tn - 1) // tn) * tn
        if n_pad != N:    # zero padding contributes nothing to the L1 sums
            pad = ((0, 0), (0, 0), (0, n_pad - N))
            pred_t = jnp.pad(pred_t, pad)
            targ_t = jnp.pad(targ_t, pad)

    grid = (n_pad // tn,)
    kernel = functools.partial(_pose_criterion_kernel, n_true=N, t_len=T)

    out = pl.pallas_call(
        kernel,
        out_shape=jax.ShapeDtypeStruct((1,), jnp.float32),
        grid=grid,
        in_specs=[
            pl.BlockSpec(memory_space=pltpu.MemorySpace.SMEM),        # [sax,saq,srx,srq]
            pl.BlockSpec((T, 6, tn), lambda i: (0, 0, i)),            # pred block (VMEM)
            pl.BlockSpec((T, 6, tn), lambda i: (0, 0, i)),            # targ block (VMEM)
        ],
        out_specs=pl.BlockSpec(memory_space=pltpu.MemorySpace.SMEM),  # scalar loss
        scratch_shapes=[pltpu.SMEM((4,), jnp.float32)],               # partial L1 sums
        compiler_params=pltpu.CompilerParams(
            dimension_semantics=("arbitrary",)),                      # reduction axis
    )(params, pred_t, targ_t)
    return out[0]


def _reference(pred, targ, sax=0.0, saq=0.0, srx=0.0, srq=0.0):
    """Pure-JAX reference mirroring the PyTorch module (for correctness check)."""
    pred = pred.astype(jnp.float32)
    targ = targ.astype(jnp.float32)
    t_abs = jnp.mean(jnp.abs(pred[..., :3] - targ[..., :3]))
    q_abs = jnp.mean(jnp.abs(pred[..., 3:] - targ[..., 3:]))
    abs_loss = jnp.exp(-sax) * t_abs + sax + jnp.exp(-saq) * q_abs + saq
    if pred.shape[1] == 1:
        return abs_loss
    pv = pred[:, 1:, :] - pred[:, :-1, :]
    tv = targ[:, 1:, :] - targ[:, :-1, :]
    t_vo = jnp.mean(jnp.abs(pv[..., :3] - tv[..., :3]))
    q_vo = jnp.mean(jnp.abs(pv[..., 3:] - tv[..., 3:]))
    vo_loss = jnp.exp(-srx) * t_vo + srx + jnp.exp(-srq) * q_vo + srq
    return abs_loss + vo_loss


if __name__ == "__main__":
    sax, saq, srx, srq = 0.0, 0.0, 0.0, 0.0   # module defaults

    key = jax.random.PRNGKey(0)
    k1, k2, k3, k4 = jax.random.split(key, 4)

    # Small shape consistent with the module: batch N=2, sequence T=8, pose dim 6.
    N, T, D = 2, 8, 6
    pred = jax.random.normal(k1, (N, T, D), dtype=jnp.float32)
    targ = jax.random.normal(k2, (N, T, D), dtype=jnp.float32)
    loss = jax.block_until_ready(pose_criterion_rel(pred, targ, sax, saq, srx, srq))
    ref = _reference(pred, targ, sax, saq, srx, srq)
    assert jnp.allclose(loss, ref, rtol=1e-4, atol=1e-5), (loss, ref)

    # Exercise the tiled / zero-padded grid path (3 lane tiles of 128).
    N2, T2 = 300, 5
    pred2 = jax.random.normal(k3, (N2, T2, D), dtype=jnp.float32)
    targ2 = jax.random.normal(k4, (N2, T2, D), dtype=jnp.float32)
    loss2 = jax.block_until_ready(
        pose_criterion_rel(pred2, targ2, 0.1, -0.2, 0.05, -0.1, tile_n=128))
    ref2 = _reference(pred2, targ2, 0.1, -0.2, 0.05, -0.1)
    assert jnp.allclose(loss2, ref2, rtol=1e-4, atol=1e-5), (loss2, ref2)

    # T == 1 static branch (no relative / VO term).
    pred3 = jax.random.normal(k1, (4, 1, D), dtype=jnp.float32)
    targ3 = jax.random.normal(k2, (4, 1, D), dtype=jnp.float32)
    loss3 = jax.block_until_ready(pose_criterion_rel(pred3, targ3))
    ref3 = _reference(pred3, targ3)
    assert jnp.allclose(loss3, ref3, rtol=1e-4, atol=1e-5), (loss3, ref3)

    print("KERNEL_OK")
</pallas_src>

<mosaic_0001>
module attributes {stable_mosaic.version = 11 : i64} {
  func.func @_pose_criterion_kernel(%arg0: i32, %arg1: memref<4xf32, #tpu.memory_space<smem>>, %arg2: memref<8x6x2xf32, #tpu.memory_space<vmem>>, %arg3: memref<8x6x2xf32, #tpu.memory_space<vmem>>, %arg4: memref<1xf32, #tpu.memory_space<smem>>, %arg5: memref<4xf32, #tpu.memory_space<smem>>) attributes {dimension_semantics = [#tpu.dimension_semantics<arbitrary>], iteration_bounds = array<i64: 1>, scalar_prefetch = 0 : i64, scratch_operands = 1 : i64, tpu.core_type = #tpu.core_type<tc>, window_params = [{transform_indices = @transform_0, window_bounds = array<i64: 4>}, {transform_indices = @transform_1, window_bounds = array<i64: 8, 6, 2>}, {transform_indices = @transform_2, window_bounds = array<i64: 8, 6, 2>}, {transform_indices = @transform_3, window_bounds = array<i64: 1>}]} {
    %c0 = arith.constant 0 : index
    %c0_0 = arith.constant 0 : index
    %c0_1 = arith.constant 0 : index
    %0 = vector.load %arg2[%c0, %c0_0, %c0_1] : memref<8x6x2xf32, #tpu.memory_space<vmem>>, vector<8x6x2xf32>
    %c0_2 = arith.constant 0 : index
    %c0_3 = arith.constant 0 : index
    %c0_4 = arith.constant 0 : index
    %1 = vector.load %arg3[%c0_2, %c0_3, %c0_4] : memref<8x6x2xf32, #tpu.memory_space<vmem>>, vector<8x6x2xf32>
    %2 = arith.subf %0, %1 : vector<8x6x2xf32>
    %3 = math.absf %2 : vector<8x6x2xf32>
    %4 = vector.extract_strided_slice %3 {offsets = [0, 0, 0], sizes = [8, 3, 2], strides = [1, 1, 1]} : vector<8x6x2xf32> to vector<8x3x2xf32>
    %5 = vector.shape_cast %4 : vector<8x3x2xf32> to vector<1x8x3x2xf32>
    %cst = arith.constant dense<0.000000e+00> : vector<1xf32>
    %6 = vector.multi_reduction <add>, %5, %cst [1, 2, 3] : vector<1x8x3x2xf32> to vector<1xf32>
    %7 = vector.shape_cast %6 : vector<1xf32> to vector<1x1x1x1xf32>
    %8 = vector.extract %7[0, 0, 0, 0] : f32 from vector<1x1x1x1xf32>
    %9 = vector.extract_strided_slice %3 {offsets = [0, 3, 0], sizes = [8, 3, 2], strides = [1, 1, 1]} : vector<8x6x2xf32> to vector<8x3x2xf32>
    %10 = vector.shape_cast %9 : vector<8x3x2xf32> to vector<1x8x3x2xf32>
    %cst_5 = arith.constant dense<0.000000e+00> : vector<1xf32>
    %11 = vector.multi_reduction <add>, %10, %cst_5 [1, 2, 3] : vector<1x8x3x2xf32> to vector<1xf32>
    %12 = vector.shape_cast %11 : vector<1xf32> to vector<1x1x1x1xf32>
    %13 = vector.extract %12[0, 0, 0, 0] : f32 from vector<1x1x1x1xf32>
    %14 = vector.extract_strided_slice %2 {offsets = [1, 0, 0], sizes = [7, 6, 2], strides = [1, 1, 1]} : vector<8x6x2xf32> to vector<7x6x2xf32>
    %15 = vector.extract_strided_slice %2 {offsets = [0, 0, 0], sizes = [7, 6, 2], strides = [1, 1, 1]} : vector<8x6x2xf32> to vector<7x6x2xf32>
    %16 = arith.subf %14, %15 : vector<7x6x2xf32>
    %17 = math.absf %16 : vector<7x6x2xf32>
    %18 = vector.extract_strided_slice %17 {offsets = [0, 0, 0], sizes = [7, 3, 2], strides = [1, 1, 1]} : vector<7x6x2xf32> to vector<7x3x2xf32>
    %19 = vector.shape_cast %18 : vector<7x3x2xf32> to vector<1x7x3x2xf32>
    %cst_6 = arith.constant dense<0.000000e+00> : vector<1xf32>
    %20 = vector.multi_reduction <add>, %19, %cst_6 [1, 2, 3] : vector<1x7x3x2xf32> to vector<1xf32>
    %21 = vector.shape_cast %20 : vector<1xf32> to vector<1x1x1x1xf32>
    %22 = vector.extract %21[0, 0, 0, 0] : f32 from vector<1x1x1x1xf32>
    %23 = vector.extract_strided_slice %17 {offsets = [0, 3, 0], sizes = [7, 3, 2], strides = [1, 1, 1]} : vector<7x6x2xf32> to vector<7x3x2xf32>
    %24 = vector.shape_cast %23 : vector<7x3x2xf32> to vector<1x7x3x2xf32>
    %cst_7 = arith.constant dense<0.000000e+00> : vector<1xf32>
    %25 = vector.multi_reduction <add>, %24, %cst_7 [1, 2, 3] : vector<1x7x3x2xf32> to vector<1xf32>
    %26 = vector.shape_cast %25 : vector<1xf32> to vector<1x1x1x1xf32>
    %27 = vector.extract %26[0, 0, 0, 0] : f32 from vector<1x1x1x1xf32>
    %c0_i32 = arith.constant 0 : i32
    %28 = arith.cmpi eq, %arg0, %c0_i32 : i32
    %29 = arith.extui %28 : i1 to i32
    %c0_i32_8 = arith.constant 0 : i32
    %30 = arith.cmpi ne, %29, %c0_i32_8 : i32
    scf.if %30 {
      %c0_13 = arith.constant 0 : index
      %37 = memref.load %arg5[%c0_13] : memref<4xf32, #tpu.memory_space<smem>>
      memref.store %8, %arg5[%c0_13] : memref<4xf32, #tpu.memory_space<smem>>
      %c1 = arith.constant 1 : index
      %38 = memref.load %arg5[%c1] : memref<4xf32, #tpu.memory_space<smem>>
      memref.store %13, %arg5[%c1] : memref<4xf32, #tpu.memory_space<smem>>
      %c2 = arith.constant 2 : index
      %39 = memref.load %arg5[%c2] : memref<4xf32, #tpu.memory_space<smem>>
      memref.store %22, %arg5[%c2] : memref<4xf32, #tpu.memory_space<smem>>
      %c3 = arith.constant 3 : index
      %40 = memref.load %arg5[%c3] : memref<4xf32, #tpu.memory_space<smem>>
      memref.store %27, %arg5[%c3] : memref<4xf32, #tpu.memory_space<smem>>
    } else {
    }
    %c0_i32_9 = arith.constant 0 : i32
    %31 = arith.cmpi sgt, %arg0, %c0_i32_9 : i32
    %32 = arith.extui %31 : i1 to i32
    %c0_i32_10 = arith.constant 0 : i32
    %33 = arith.cmpi ne, %32, %c0_i32_10 : i32
    scf.if %33 {
      %c0_13 = arith.constant 0 : index
      %37 = memref.load %arg5[%c0_13] : memref<4xf32, #tpu.memory_space<smem>>
      %38 = arith.addf %37, %8 : f32
      %c0_14 = arith.constant 0 : index
      %39 = memref.load %arg5[%c0_14] : memref<4xf32, #tpu.memory_space<smem>>
      memref.store %38, %arg5[%c0_14] : memref<4xf32, #tpu.memory_space<smem>>
      %c1 = arith.constant 1 : index
      %40 = memref.load %arg5[%c1] : memref<4xf32, #tpu.memory_space<smem>>
      %41 = arith.addf %40, %13 : f32
      %c1_15 = arith.constant 1 : index
      %42 = memref.load %arg5[%c1_15] : memref<4xf32, #tpu.memory_space<smem>>
      memref.store %41, %arg5[%c1_15] : memref<4xf32, #tpu.memory_space<smem>>
      %c2 = arith.constant 2 : index
      %43 = memref.load %arg5[%c2] : memref<4xf32, #tpu.memory_space<smem>>
      %44 = arith.addf %43, %22 : f32
      %c2_16 = arith.constant 2 : index
      %45 = memref.load %arg5[%c2_16] : memref<4xf32, #tpu.memory_space<smem>>
      memref.store %44, %arg5[%c2_16] : memref<4xf32, #tpu.memory_space<smem>>
      %c3 = arith.constant 3 : index
      %46 = memref.load %arg5[%c3] : memref<4xf32, #tpu.memory_space<smem>>
      %47 = arith.addf %46, %27 : f32
      %c3_17 = arith.constant 3 : index
      %48 = memref.load %arg5[%c3_17] : memref<4xf32, #tpu.memory_space<smem>>
      memref.store %47, %arg5[%c3_17] : memref<4xf32, #tpu.memory_space<smem>>
    } else {
    }
    %c0_i32_11 = arith.constant 0 : i32
    %34 = arith.cmpi eq, %arg0, %c0_i32_11 : i32
    %35 = arith.extui %34 : i1 to i32
    %c0_i32_12 = arith.constant 0 : i32
    %36 = arith.cmpi ne, %35, %c0_i32_12 : i32
    scf.if %36 {
      %c0_13 = arith.constant 0 : index
      %37 = memref.load %arg1[%c0_13] : memref<4xf32, #tpu.memory_space<smem>>
      %c1 = arith.constant 1 : index
      %38 = memref.load %arg1[%c1] : memref<4xf32, #tpu.memory_space<smem>>
      %c2 = arith.constant 2 : index
      %39 = memref.load %arg1[%c2] : memref<4xf32, #tpu.memory_space<smem>>
      %c3 = arith.constant 3 : index
      %40 = memref.load %arg1[%c3] : memref<4xf32, #tpu.memory_space<smem>>
      %cst_14 = arith.constant 0.000000e+00 : f32
      %41 = arith.subf %cst_14, %37 : f32
      %42 = math.exp %41 : f32
      %c0_15 = arith.constant 0 : index
      %43 = memref.load %arg5[%c0_15] : memref<4xf32, #tpu.memory_space<smem>>
      %44 = arith.mulf %42, %43 : f32
      %cst_16 = arith.constant 0.020833334 : f32
      %45 = arith.mulf %44, %cst_16 : f32
      %46 = arith.addf %45, %37 : f32
      %cst_17 = arith.constant 0.000000e+00 : f32
      %47 = arith.subf %cst_17, %38 : f32
      %48 = math.exp %47 : f32
      %c1_18 = arith.constant 1 : index
      %49 = memref.load %arg5[%c1_18] : memref<4xf32, #tpu.memory_space<smem>>
      %50 = arith.mulf %48, %49 : f32
      %cst_19 = arith.constant 0.020833334 : f32
      %51 = arith.mulf %50, %cst_19 : f32
      %52 = arith.addf %46, %51 : f32
      %53 = arith.addf %52, %38 : f32
      %cst_20 = arith.constant 0.000000e+00 : f32
      %54 = arith.subf %cst_20, %39 : f32
      %55 = math.exp %54 : f32
      %c2_21 = arith.constant 2 : index
      %56 = memref.load %arg5[%c2_21] : memref<4xf32, #tpu.memory_space<smem>>
      %57 = arith.mulf %55, %56 : f32
      %cst_22 = arith.constant 0.0238095243 : f32
      %58 = arith.mulf %57, %cst_22 : f32
      %59 = arith.addf %53, %58 : f32
      %60 = arith.addf %59, %39 : f32
      %cst_23 = arith.constant 0.000000e+00 : f32
      %61 = arith.subf %cst_23, %40 : f32
      %62 = math.exp %61 : f32
      %c3_24 = arith.constant 3 : index
      %63 = memref.load %arg5[%c3_24] : memref<4xf32, #tpu.memory_space<smem>>
      %64 = arith.mulf %62, %63 : f32
      %cst_25 = arith.constant 0.0238095243 : f32
      %65 = arith.mulf %64, %cst_25 : f32
      %66 = arith.addf %60, %65 : f32
      %67 = arith.addf %66, %40 : f32
      %c0_26 = arith.constant 0 : index
      %68 = memref.load %arg4[%c0_26] : memref<1xf32, #tpu.memory_space<smem>>
      memref.store %67, %arg4[%c0_26] : memref<1xf32, #tpu.memory_space<smem>>
    } else {
    }
    return
  }
  func.func @transform_0(%arg0: i32) -> i32 {
    %c0_i32 = arith.constant 0 : i32
    %c0_i32_0 = arith.constant 0 : i32
    return %c0_i32 : i32
  }
  func.func @transform_1(%arg0: i32) -> (i32, i32, i32) {
    %c0_i32 = arith.constant 0 : i32
    %c0_i32_0 = arith.constant 0 : i32
    %c0_i32_1 = arith.constant 0 : i32
    return %c0_i32, %c0_i32_0, %arg0 : i32, i32, i32
  }
  func.func @transform_2(%arg0: i32) -> (i32, i32, i32) {
    %c0_i32 = arith.constant 0 : i32
    %c0_i32_0 = arith.constant 0 : i32
    %c0_i32_1 = arith.constant 0 : i32
    return %c0_i32, %c0_i32_0, %arg0 : i32, i32, i32
  }
  func.func @transform_3(%arg0: i32) -> i32 {
    %c0_i32 = arith.constant 0 : i32
    %c0_i32_0 = arith.constant 0 : i32
    return %c0_i32 : i32
  }
}

</mosaic_0001>

<bundles_post_ra>
// kernel: tpu_custom_call.1
= control target key start
LH: loop header
LB: loop body
LE: loop exit
PB: predicated region body
PF: predicated region fallthrough
CT: control target
= control target key end

     0   :  { %8 = vsyncpa [#allocation5], 0  ;;  %s536_s0 = inlined_call_operand.vmem [shape: f32[4], index: 0, kind: input, shape index: {}]   ;;  %s537_s1 = inlined_call_operand.vmem [shape: f32[8,6,2], index: 1, kind: input, shape index: {}]   ;;  %s538_s2 = inlined_call_operand.vmem [shape: f32[8,6,2], index: 2, kind: input, shape index: {}]   ;;  %s539_s3 = inlined_call_operand.hbm [shape: f32[1], index: 3, kind: output, shape index: {}]  }
   0x1   :  { %9 = vsyncpa [#allocation4], 0  ;;  %s16_s14 = sshll.u32 %s536_s0, 4  ;;  %s17_s14 = int_to_ptr.vmem [resolvable:$true] %s16_s14 }
   0x2   :  { %s341_s15 = scalar_lea.vmem %s17_s14, 16  ;;  %p346_p1 = scmp.lt.s32.totalorder %s17_s14, %s17_s14 }
   0x3   :  { %p342_p0 = scmp.ne.s32.totalorder %s17_s14, %s341_s15  ;;  %p347_p2 = scmp.lt.s32.totalorder %s341_s15, %s341_s15 }
   0x5   :  { %p348_p3 = por %p347_p2, %p346_p1 }
   0x7   :  { %p349_p4 = pnand %p348_p3, %p342_p0 }
   0x9   :  { %352 = shalt.err (!%p349_p4)
}
   0xa   :  { %s367_s16 = smov [#allocation3]  }
   0xb   :  { %19 = dma.vmem_to_smem %s17_s14, 16, %s367_s16, [#allocation5]  }
   0xc   :  { %363 = dma.done.wait [#allocation5], 16  }
   0xd   :  { %364 = vsyncadd [#allocation5], 4294967280 }
   0xe   :  { %27 = sfence }
   0xf   :  { %v28_v0 = vld [vmem:[%s537_s1] sm:$0x3f]  ;;  %v29_v1 = vld [vmem:[%s537_s1 + $0x8] sm:$0x3f]  ;;  %v30_v2 = vld [vmem:[%s537_s1 + $0x10] sm:$0x3f] }
  0x10   :  { %v31_v3 = vld [vmem:[%s537_s1 + $0x18] sm:$0x3f]  ;;  %v32_v4 = vld [vmem:[%s537_s1 + $0x20] sm:$0x3f]  ;;  %v33_v5 = vld [vmem:[%s537_s1 + $0x28] sm:$0x3f] }
  0x11   :  { %v34_v6 = vld [vmem:[%s537_s1 + $0x30] sm:$0x3f]  ;;  %v35_v7 = vld [vmem:[%s537_s1 + $0x38] sm:$0x3f]  ;;  %v36_v8 = vld [vmem:[%s538_s2] sm:$0x3f] }
  0x12   :  { %v37_v9 = vld [vmem:[%s538_s2 + $0x8] sm:$0x3f]  ;;  %v38_v10 = vld [vmem:[%s538_s2 + $0x10] sm:$0x3f]  ;;  %v39_v11 = vld [vmem:[%s538_s2 + $0x18] sm:$0x3f]  ;;  %v428_v12 = vsub.f32 %v28_v0, %v36_v8 }
  0x13   :  { %v40_v13 = vld [vmem:[%s538_s2 + $0x20] sm:$0x3f]  ;;  %v41_v14 = vld [vmem:[%s538_s2 + $0x28] sm:$0x3f]  ;;  %v42_v15 = vld [vmem:[%s538_s2 + $0x30] sm:$0x3f]  ;;  %v439_v16 = vsub.f32 %v29_v1, %v37_v9  ;;  %v441_v17 = vsub.f32 %v30_v2, %v38_v10  ;;  %v443_v18 = vsub.f32 %v31_v3, %v39_v11 }
  0x14   :  { %v43_v19 = vld [vmem:[%s538_s2 + $0x38] sm:$0x3f]  ;;  %v448_v20 = vsub.f32 %v32_v4, %v40_v13  ;;  %v450_v21 = vsub.f32 %v33_v5, %v41_v14  ;;  %v452_v22 = vsub.f32 %v34_v6, %v42_v15  ;;  %v52_v30 = vand.u32 2147483647, %v428_v12  ;;  %s508_s2 = sld [smem:[#allocation3]]  ;;  %s510_s20 = sld [smem:[#allocation3 + $0x1]] }
  0x15   :  { %v454_v23 = vsub.f32 %v35_v7, %v43_v19  ;;  %v133_v24 = vsub.f32 %v439_v16, %v428_v12  ;;  %v134_v25 = vsub.f32 %v441_v17, %v439_v16  ;;  %v135_v26 = vsub.f32 %v443_v18, %v441_v17  ;;  %s512_s0 = sld [smem:[#allocation3 + $0x2]]  ;;  %s514_s21 = sld [smem:[#allocation3 + $0x3]] }
  0x16   :  { %v136_v27 = vsub.f32 %v448_v20, %v443_v18  ;;  %v137_v28 = vsub.f32 %v450_v21, %v448_v20  ;;  %v138_v29 = vsub.f32 %v452_v22, %v450_v21  ;;  %vm60_vm0 = vcmask 10240  }
  0x17   :  { %v139_v31 = vsub.f32 %v454_v23, %v452_v22  ;;  %v140_v32 = vand.u32 2147483647, %v133_v24  ;;  %v141_v33 = vand.u32 2147483647, %v134_v25  ;;  %v142_v34 = vand.u32 2147483647, %v135_v26 }
  0x18   :  { %v143_v35 = vand.u32 2147483647, %v136_v27  ;;  %v144_v36 = vand.u32 2147483647, %v137_v28  ;;  %v145_v40 = vand.u32 2147483647, %v138_v29 }
  0x19   :  { %v147_v37 = vsel %vm60_vm0, %v140_v32, 0.0  ;;  %v148_v38 = vsel %vm60_vm0, %v141_v33, 0.0  ;;  %v150_v39 = vsel %vm60_vm0, %v142_v34, 0.0  ;;  %v146_v41 = vand.u32 2147483647, %v139_v31 }
  0x1a   :  { %v149_v42 = vadd.f32 %v148_v38, %v147_v37  ;;  %v152_v43 = vsel %vm60_vm0, %v143_v35, 0.0  ;;  %v53_v44 = vand.u32 2147483647, %v439_v16  ;;  %v54_v45 = vand.u32 2147483647, %v441_v17  ;;  %s251_s22 = ssub.f32 0.0, %s508_s2 }
  0x1b   :  { %v61_v46 = vsel %vm60_vm0, %v52_v30, 0.0  ;;  %v55_v48 = vand.u32 2147483647, %v443_v18  ;;  %v154_v49 = vsel %vm60_vm0, %v144_v36, 0.0  ;;  %v56_v50 = vand.u32 2147483647, %v448_v20 }
  0x1c   :  { %v151_v47 = vadd.f32 %v150_v39, %v149_v42  ;;  %v62_v51 = vsel %vm60_vm0, %v53_v44, 0.0  ;;  %v64_v52 = vsel %vm60_vm0, %v54_v45, 0.0  ;;  %v156_v54 = vsel %vm60_vm0, %v145_v40, 0.0  ;;  %s260_s23 = ssub.f32 0.0, %s510_s20 }
  0x1d   :  { %v158_v55 = vsel %vm60_vm0, %v146_v41, 0.0  ;;  %v63_v56 = vadd.f32 %v62_v51, %v61_v46  ;;  %v57_v57 = vand.u32 2147483647, %v450_v21  ;;  %v58_v58 = vand.u32 2147483647, %v452_v22  ;;  %s270_s24 = ssub.f32 0.0, %s512_s0 }
  0x1e   :  { %v153_v53 = vadd.f32 %v152_v43, %v151_v47  ;;  %v66_v59 = vsel %vm60_vm0, %v55_v48, 0.0  ;;  %v176_v60 = vrot.slane %v140_v32, 3  ;;  %v177_v63 = vrot.slane %v141_v33, 3  ;;  %s280_s25 = ssub.f32 0.0, %s514_s21 }
  0x1f   :  { %v65_v62 = vadd.f32 %v64_v52, %v63_v56  ;;  %v178_v0 = vrot.slane %v142_v34, 3  ;;  %v59_v1 = vand.u32 2147483647, %v454_v23  ;;  %v68_v2 = vsel %vm60_vm0, %v56_v50, 0.0 }
  0x20   :  { %v155_v61 = vadd.f32 %v154_v49, %v153_v53  ;;  %v179_v3 = vrot.slane %v143_v35, 3  ;;  %v180_v4 = vrot.slane %v144_v36, 3  ;;  %v190_v7 = vsel %vm60_vm0, %v176_v60, 0.0 }
  0x21   :  { %v67_v6 = vadd.f32 %v66_v59, %v65_v62  ;;  %v191_v8 = vsel %vm60_vm0, %v177_v63, 0.0  ;;  %v70_v9 = vsel %vm60_vm0, %v57_v57, 0.0  ;;  %v181_v10 = vrot.slane %v145_v40, 3 }
  0x22   :  { %v157_v5 = vadd.f32 %v156_v54, %v155_v61  ;;  %v192_v11 = vadd.f32 %v191_v8, %v190_v7  ;;  %v193_v12 = vsel %vm60_vm0, %v178_v0, 0.0  ;;  %v72_v15 = vsel %vm60_vm0, %v58_v58, 0.0 }
  0x23   :  { %v69_v14 = vadd.f32 %v68_v2, %v67_v6  ;;  %v195_v16 = vsel %vm60_vm0, %v179_v3, 0.0  ;;  %v93_v18 = vrot.slane %v52_v30, 3  ;;  %v94_v19 = vrot.slane %v53_v44, 3 }
  0x24   :  { %v159_v13 = vadd.f32 %v158_v55, %v157_v5  ;;  %v194_v17 = vadd.f32 %v193_v12, %v192_v11  ;;  %v95_v20 = vrot.slane %v54_v45, 3  ;;  %v182_v22 = vrot.slane %v146_v41, 3 }
  0x25   :  { %v71_v21 = vadd.f32 %v70_v9, %v69_v14  ;;  %v197_v23 = vsel %vm60_vm0, %v180_v4, 0.0  ;;  %v96_v24 = vrot.slane %v55_v48, 3  ;;  %v74_v25 = vsel %vm60_vm0, %v59_v1, 0.0 }
  0x26   :  { %160 = vadd.xlane.f32.xlu1 %v159_v13  ;;  %v196_v26 = vadd.f32 %v195_v16, %v194_v17  ;;  %v199_v27 = vsel %vm60_vm0, %v181_v10, 0.0  ;;  %v109_v28 = vsel %vm60_vm0, %v93_v18, 0.0  ;;  %v97_v31 = vrot.slane %v56_v50, 3 }
  0x27   :  { %v73_v29 = vadd.f32 %v72_v15, %v71_v21  ;;  %v110_v32 = vsel %vm60_vm0, %v94_v19, 0.0  ;;  %v112_v30 = vsel %vm60_vm0, %v95_v20, 0.0  ;;  %v201_v36 = vsel %vm60_vm0, %v182_v22, 0.0 }
  0x28   :  { %v198_v33 = vadd.f32 %v197_v23, %v196_v26  ;;  %v111_v34 = vadd.f32 %v110_v32, %v109_v28  ;;  %v98_v37 = vrot.slane %v57_v57, 3  ;;  %v114_v38 = vsel %vm60_vm0, %v96_v24, 0.0 }
  0x29   :  { %v75_v35 = vadd.f32 %v74_v25, %v73_v29  ;;  %v99_v41 = vrot.slane %v58_v58, 3  ;;  %v116_v42 = vsel %vm60_vm0, %v97_v31, 0.0  ;;  %v100_v45 = vrot.slane %v59_v1, 3 }
  0x2a   :  { %v200_v39 = vadd.f32 %v199_v27, %v198_v33  ;;  %v113_v40 = vadd.f32 %v112_v30, %v111_v34  ;;  %v118_v46 = vsel %vm60_vm0, %v98_v37, 0.0  ;;  %v252_v0 = vstv %s251_s22 }
  0x2b   :  { %76 = vadd.xlane.f32.xlu0 %v75_v35  ;;  %v120_v48 = vsel %vm60_vm0, %v99_v41, 0.0  ;;  %v122_v50 = vsel %vm60_vm0, %v100_v45, 0.0  ;;  %v261_v1 = vstv %s260_s23  ;;  %v271_v3 = vstv %s270_s24 }
  0x2c   :  { %v202_v43 = vadd.f32 %v201_v36, %v200_v39  ;;  %v115_v44 = vadd.f32 %v114_v38, %v113_v40  ;;  %v253_v5 = vmul.f32 1.442695, %v252_v0  ;;  %v281_v6 = vstv %s280_s25  ;;  %s353_s25 = scalar_lea.hbm %s539_s3, 16 }
  0x2d   :  { %v262_v10 = vmul.f32 1.442695, %v261_v1  ;;  %v272_v12 = vmul.f32 1.442695, %v271_v3  ;;  %v282_v13 = vmul.f32 1.442695, %v281_v6  ;;  %p354_p5 = scmp.ne.s32.totalorder %s539_s3, %s353_s25  ;;  %p357_p6 = scmp.lt.u32.totalorder %s353_s25, %s539_s3 }
  0x2e   :  { %203 = vadd.xlane.f32.xlu1 %v202_v43  ;;  %v117_v47 = vadd.f32 %v116_v42, %v115_v44  ;;  %333 = vpow2.f32 %v253_v5 }
  0x2f   :  { %335 = vpow2.f32 %v262_v10  ;;  %p359_p7 = pnand %p357_p6, %p354_p5 }
  0x30   :  { %v119_v49 = vadd.f32 %v118_v46, %v117_v47  ;;  %337 = vpow2.f32 %v272_v12 }
  0x31   :  { %339 = vpow2.f32 %v282_v13 }
  0x32   :  { %v121_v51 = vadd.f32 %v120_v48, %v119_v49 }
  0x34   :  { %v123_v52 = vadd.f32 %v122_v50, %v121_v51 }
  0x36   :  { %124 = vadd.xlane.f32.xlu0 %v123_v52 }
  0x38   :  { %v334_v25 = vpop.eup %333 }
  0x39   :  { %v336_v26 = vpop.eup %335 }
  0x3a   :  { %v338_v27 = vpop.eup %337 }
  0x3b   :  { %v340_v28 = vpop.eup %339 }
  0xb3   :  { %v161_v53 = vpop.xlane.xlu1 %160 }
  0xb4   :  { %v162_v56 = vrot.slane %v161_v53, 4 }
  0xb6   :  { %v163_v62 = vadd.f32 %v162_v56, %v161_v53 }
  0xb8   :  { %v77_v54 = vpop.xlane.xlu0 %76  ;;  %v164_v7 = vrot.slane %v163_v62, 2 }
  0xb9   :  { %v78_v55 = vrot.slane %v77_v54, 4 }
  0xba   :  { %v165_v16 = vadd.f32 %v164_v7, %v163_v62 }
  0xbb   :  { %v79_v57 = vadd.f32 %v78_v55, %v77_v54  ;;  %v204_v58 = vpop.xlane.xlu1 %203 }
  0xbc   :  { %v205_v59 = vrot.slane %v204_v58, 4  ;;  %v166_v20 = vrot.slane %v165_v16, 1 }
  0xbd   :  { %v80_v60 = vrot.slane %v79_v57, 2 }
  0xbe   :  { %v206_v61 = vadd.f32 %v205_v59, %v204_v58  ;;  %v167_v24 = vadd.f32 %v166_v20, %v165_v16 }
  0xbf   :  { %v81_v63 = vadd.f32 %v80_v60, %v79_v57 }
  0xc0   :  { %v207_v4 = vrot.slane %v206_v61, 2 }
  0xc1   :  { %v82_v2 = vrot.slane %v81_v63, 1 }
  0xc2   :  { %v208_v14 = vadd.f32 %v207_v4, %v206_v61 }
  0xc3   :  { %v125_v8 = vpop.xlane.xlu0 %124  ;;  %v83_v9 = vadd.f32 %v82_v2, %v81_v63 }
  0xc4   :  { %v126_v11 = vrot.slane %v125_v8, 4  ;;  %v209_v19 = vrot.slane %v208_v14, 1 }
  0xc5   :  { %315 = vpush %v83_v9 }
  0xc6   :  { %v127_v15 = vadd.f32 %v126_v11, %v125_v8  ;;  %v210_v23 = vadd.f32 %v209_v19, %v208_v14 }
  0xc8   :  { %v128_v17 = vrot.slane %v127_v15, 2 }
  0xca   :  { %v129_v18 = vadd.f32 %v128_v17, %v127_v15 }
  0xcc   :  { %v130_v21 = vrot.slane %v129_v18, 1 }
  0xce   :  { %v131_v22 = vadd.f32 %v130_v21, %v129_v18 }
  0xd0   :  { %317 = vpush %v131_v22 }
  0xd1   :  { %319 = vpush %v167_v24 }
  0xd2   :  { %321 = vpush %v210_v23 }
  0xd3   :  { %323 = vpush %v334_v25 }
  0xd4   :  { %325 = vpush %v336_v26 }
  0xd5   :  { %327 = vpush %v338_v27 }
  0xd6   :  { %329 = vpush %v340_v28 }
  0xf6   :  { %s316_s26 = spop %315 }
 0x101   :  { %s318_s27 = spop %317 }
 0x102   :  { %s320_s28 = spop %319 }
 0x103   :  { %s322_s29 = spop %321 }
 0x104   :  { %s324_s30 = spop %323 }
 0x105   :  { %s257_s4 = smul.f32 %s324_s30, %s316_s26  ;;  %s326_s5 = spop %325 }
 0x106   :  { %s266_s6 = smul.f32 %s326_s5, %s318_s27  ;;  %s328_s7 = spop %327 }
 0x107   :  { %s258_s8 = smul.f32 0.020833334, %s257_s4  ;;  %s330_s10 = spop %329 }
 0x108   :  { %s267_s9 = smul.f32 0.020833334, %s266_s6 }
 0x109   :  { %s259_s11 = sadd.f32 %s258_s8, %s508_s2  ;;  %s276_s12 = smul.f32 %s328_s7, %s320_s28 }
 0x10a   :  { %s286_s1 = smul.f32 %s330_s10, %s322_s29 }
 0x10b   :  { %s268_s13 = sadd.f32 %s267_s9, %s259_s11  ;;  %s277_s15 = smul.f32 0.023809524, %s276_s12 }
 0x10c   :  { %s287_s17 = smul.f32 0.023809524, %s286_s1 }
 0x10d   :  { %s269_s14 = sadd.f32 %s510_s20, %s268_s13 }
 0x10f   :  { %s278_s16 = sadd.f32 %s277_s15, %s269_s14 }
 0x111   :  { %s279_s18 = sadd.f32 %s512_s0, %s278_s16 }
 0x113   :  { %s288_s19 = sadd.f32 %s287_s17, %s279_s18 }
 0x115   :  { %s289_s22 = sadd.f32 %s514_s21, %s288_s19 }
 0x117   :  { %291 = sst [smem:[#allocation6]] %s289_s22 }
 0x118   :  { %362 = shalt.err (!%p359_p7)
}
 0x119   :  { %s368_s20 = smov [#allocation6]  }
 0x11a   :  { %299 = dma.smem_to_hbm %s368_s20, 16, %s539_s3, [#allocation4]  }
 0x11b   :  { %365 = dma.done.wait [#allocation4], 16  }
 0x11c   :  { %366 = vsyncadd [#allocation4], 4294967280 }
 0x11d   :  { %303 = sfence }
 0x11e   :  { %304 = vsyncpa [#allocation4], 1 }
 0x11f   :  { %305 = vsyncpa [#allocation5], 1 }

</bundles_post_ra>
